<compile_context>
chip_gen: v7x
topology: tpu7x:2x2x1
jax: 0.10.0
libtpu: 0.0.40
codegen_flags: <defaults>
</compile_context>

<pallas_src>
import math
import functools

import jax
import jax.numpy as jnp
from jax.experimental import pallas as pl
from jax.experimental.pallas import tpu as pltpu

MIN_NORM = 1e-15
BALL_EPS_F32 = 4e-3      # PoincareBall.eps[torch.float32]


def _round_up(n, m):
    return ((n + m - 1) // m) * m


def _artanh(y):
    # Reference clamps to (-1+1e-15, 1-1e-15); 1e-15 underflows in f32 so we use 1e-7.
    y = jnp.clip(y, -1.0 + 1e-7, 1.0 - 1e-7)
    return 0.5 * (jnp.log1p(y) - jnp.log1p(-y))


def _hypact_kernel(x_ref, o_ref, *, c_in, c_out, act):
    sc_in = math.sqrt(c_in)
    sc_out = math.sqrt(c_out)
    maxnorm = (1.0 - BALL_EPS_F32) / sc_out

    x = x_ref[...]                                                     # (tm, Dp) f32

    # ---- logmap0(x, c_in) ----
    p_norm = jnp.maximum(jnp.sqrt(jnp.sum(x * x, axis=-1, keepdims=True)), MIN_NORM)
    inv_p = pl.reciprocal(p_norm, approx=True)                         # (tm,1) on EUP
    log_scale = (1.0 / sc_in) * _artanh(sc_in * p_norm) * inv_p        # (tm,1)
    xt = log_scale * x                                                 # tangent vec at 0

    # ---- activation (ReLU by default); proj_tan0 is the identity on the ball ----
    xt = act(xt)

    # ---- expmap0(xt, c_out) ----
    u_norm = jnp.maximum(jnp.sqrt(jnp.sum(xt * xt, axis=-1, keepdims=True)), MIN_NORM)
    su = sc_out * u_norm
    t = jnp.tanh(su)
    exp_scale = t * pl.reciprocal(su, approx=True)                     # (tm,1)

    # ---- proj(., c_out): ||expmap0(u)|| = tanh(su)/sqrt(c_out) analytically ----
    g_norm = jnp.maximum(t * (1.0 / sc_out), MIN_NORM)
    proj_scale = jnp.minimum(1.0, maxnorm * pl.reciprocal(g_norm, approx=True))

    o_ref[...] = ((exp_scale * proj_scale) * xt).astype(o_ref.dtype)


def hyp_act(x, *, c_in=1.0, c_out=1.0, act=None, tm=512):
    """HypAct forward. x: (N, D) points on the c_in Poincare ball. Returns (N, D)."""
    if act is None:
        act = lambda v: jnp.maximum(v, 0.0)    # ReLU
    # TODO(synk): the torch module accepts arbitrary `act` callables; only
    #             jnp-traceable activations are supported here.
    x = jnp.asarray(x, jnp.float32)
    N, D = x.shape

    # Lane-dense feature dim: zero lanes do not change any L2 norm, stripped below.
    Dp = _round_up(max(D, 1), 128)

    # Row tile: multiple of 8, capped so double-buffered (in + out) f32 tiles stay
    # within a modest VMEM budget (safe under default scoped VMEM on v5e/v6e/v7x).
    vmem_budget = 8 * 1024 * 1024                              # bytes for pipelined tiles
    tm_cap = max(8, (vmem_budget // (Dp * 16)) // 8 * 8)       # 2 bufs * (in+out) * 4 B
    tm = max(8, min((tm // 8) * 8, tm_cap, _round_up(N, 8)))

    num_tiles = (N + tm - 1) // tm
    Np = num_tiles * tm
    xp = jnp.pad(x, ((0, Np - N), (0, Dp - D)))                # zero rows/lanes are benign

    kernel = functools.partial(_hypact_kernel,
                               c_in=float(c_in), c_out=float(c_out), act=act)

    out = pl.pallas_call(
        kernel,
        out_shape=jax.ShapeDtypeStruct((Np, Dp), jnp.float32),
        grid_spec=pltpu.PrefetchScalarGridSpec(
            num_scalar_prefetch=0,
            grid=(num_tiles,),
            in_specs=[pl.BlockSpec((tm, Dp), lambda i: (i, 0))],
            out_specs=pl.BlockSpec((tm, Dp), lambda i: (i, 0)),
        ),
        compiler_params=pltpu.CompilerParams(
            dimension_semantics=("parallel",)),
    )(xp)
    return out[:N, :D]


def _hypact_ref(x, c_in, c_out):
    """Pure-jnp reference (HGCN PoincareBall math, ReLU activation)."""
    sc_in, sc_out = math.sqrt(c_in), math.sqrt(c_out)
    pn = jnp.maximum(jnp.linalg.norm(x, axis=-1, keepdims=True), MIN_NORM)
    xt = (1.0 / sc_in) * _artanh(sc_in * pn) / pn * x
    xt = jnp.maximum(xt, 0.0)
    un = jnp.maximum(jnp.linalg.norm(xt, axis=-1, keepdims=True), MIN_NORM)
    g = jnp.tanh(sc_out * un) * xt / (sc_out * un)
    gn = jnp.maximum(jnp.linalg.norm(g, axis=-1, keepdims=True), MIN_NORM)
    maxnorm = (1.0 - BALL_EPS_F32) / sc_out
    return jnp.where(gn > maxnorm, g / gn * maxnorm, g)


if __name__ == "__main__":
    key = jax.random.PRNGKey(0)
    N, D = 16, 32
    c_in, c_out = 1.0, 0.5

    # Points well inside the unit ball.
    x = 0.1 * jax.random.normal(key, (N, D), dtype=jnp.float32)

    out = hyp_act(x, c_in=c_in, c_out=c_out)
    out = jax.block_until_ready(out)

    assert out.shape == (N, D)
    assert bool(jnp.all(jnp.isfinite(out)))
    ref = _hypact_ref(x, c_in, c_out)
    # Loose gross-error check (approx EUP reciprocals introduce small error).
    assert float(jnp.max(jnp.abs(out - ref))) < 1e-2
    print("KERNEL_OK")
</pallas_src>

<mosaic_0001>
module attributes {stable_mosaic.version = 11 : i64} {
  func.func @_hypact_kernel(%arg0: i32, %arg1: memref<16x128xf32, #tpu.memory_space<vmem>>, %arg2: memref<16x128xf32, #tpu.memory_space<vmem>>) attributes {dimension_semantics = [#tpu.dimension_semantics<parallel>], iteration_bounds = array<i64: 1>, scalar_prefetch = 0 : i64, scratch_operands = 0 : i64, tpu.core_type = #tpu.core_type<tc>, window_params = [{transform_indices = @transform_0, window_bounds = array<i64: 16, 128>}, {transform_indices = @transform_1, window_bounds = array<i64: 16, 128>}]} {
    %c0 = arith.constant 0 : index
    %c0_0 = arith.constant 0 : index
    %0 = vector.load %arg1[%c0, %c0_0] : memref<16x128xf32, #tpu.memory_space<vmem>>, vector<16x128xf32>
    %1 = arith.mulf %0, %0 : vector<16x128xf32>
    %cst = arith.constant dense<0.000000e+00> : vector<16xf32>
    %2 = vector.multi_reduction <add>, %1, %cst [1] : vector<16x128xf32> to vector<16xf32>
    %3 = vector.shape_cast %2 : vector<16xf32> to vector<16x1xf32>
    %4 = math.sqrt %3 : vector<16x1xf32>
    %cst_1 = arith.constant 1.000000e-15 : f32
    %5 = vector.broadcast %cst_1 : f32 to vector<16x1xf32>
    %6 = arith.maximumf %4, %5 : vector<16x1xf32>
    %7 = tpu.reciprocal %6 {approx = true} : vector<16x1xf32> -> vector<16x1xf32>
    %cst_2 = arith.constant 1.000000e+00 : f32
    %8 = vector.broadcast %cst_2 : f32 to vector<16x1xf32>
    %9 = arith.mulf %8, %6 : vector<16x1xf32>
    %cst_3 = arith.constant -0.99999988 : f32
    %cst_4 = arith.constant 0.99999988 : f32
    %10 = vector.broadcast %cst_3 : f32 to vector<16x1xf32>
    %11 = arith.maximumf %10, %9 : vector<16x1xf32>
    %12 = vector.broadcast %cst_4 : f32 to vector<16x1xf32>
    %13 = arith.minimumf %12, %11 : vector<16x1xf32>
    %14 = math.log1p %13 : vector<16x1xf32>
    %cst_5 = arith.constant 0.000000e+00 : f32
    %15 = vector.broadcast %cst_5 : f32 to vector<16x1xf32>
    %16 = arith.subf %15, %13 : vector<16x1xf32>
    %17 = math.log1p %16 : vector<16x1xf32>
    %18 = arith.subf %14, %17 : vector<16x1xf32>
    %cst_6 = arith.constant 5.000000e-01 : f32
    %19 = vector.broadcast %cst_6 : f32 to vector<16x1xf32>
    %20 = arith.mulf %19, %18 : vector<16x1xf32>
    %cst_7 = arith.constant 1.000000e+00 : f32
    %21 = vector.broadcast %cst_7 : f32 to vector<16x1xf32>
    %22 = arith.mulf %21, %20 : vector<16x1xf32>
    %23 = arith.mulf %22, %7 : vector<16x1xf32>
    %24 = vector.broadcast %23 : vector<16x1xf32> to vector<16x128xf32>
    %25 = arith.mulf %24, %0 : vector<16x128xf32>
    %cst_8 = arith.constant 0.000000e+00 : f32
    %26 = vector.broadcast %cst_8 : f32 to vector<16x128xf32>
    %27 = arith.maximumf %25, %26 : vector<16x128xf32>
    %28 = arith.mulf %27, %27 : vector<16x128xf32>
    %cst_9 = arith.constant dense<0.000000e+00> : vector<16xf32>
    %29 = vector.multi_reduction <add>, %28, %cst_9 [1] : vector<16x128xf32> to vector<16xf32>
    %30 = vector.shape_cast %29 : vector<16xf32> to vector<16x1xf32>
    %31 = math.sqrt %30 : vector<16x1xf32>
    %cst_10 = arith.constant 1.000000e-15 : f32
    %32 = vector.broadcast %cst_10 : f32 to vector<16x1xf32>
    %33 = arith.maximumf %31, %32 : vector<16x1xf32>
    %cst_11 = arith.constant 0.707106769 : f32
    %34 = vector.broadcast %cst_11 : f32 to vector<16x1xf32>
    %35 = arith.mulf %34, %33 : vector<16x1xf32>
    %36 = math.tanh %35 : vector<16x1xf32>
    %37 = tpu.reciprocal %35 {approx = true} : vector<16x1xf32> -> vector<16x1xf32>
    %38 = arith.mulf %36, %37 : vector<16x1xf32>
    %cst_12 = arith.constant 1.41421354 : f32
    %39 = vector.broadcast %cst_12 : f32 to vector<16x1xf32>
    %40 = arith.mulf %36, %39 : vector<16x1xf32>
    %cst_13 = arith.constant 1.000000e-15 : f32
    %41 = vector.broadcast %cst_13 : f32 to vector<16x1xf32>
    %42 = arith.maximumf %40, %41 : vector<16x1xf32>
    %43 = tpu.reciprocal %42 {approx = true} : vector<16x1xf32> -> vector<16x1xf32>
    %cst_14 = arith.constant 1.4085567 : f32
    %44 = vector.broadcast %cst_14 : f32 to vector<16x1xf32>
    %45 = arith.mulf %44, %43 : vector<16x1xf32>
    %cst_15 = arith.constant 1.000000e+00 : f32
    %46 = vector.broadcast %cst_15 : f32 to vector<16x1xf32>
    %47 = arith.minimumf %46, %45 : vector<16x1xf32>
    %48 = arith.mulf %38, %47 : vector<16x1xf32>
    %49 = vector.broadcast %48 : vector<16x1xf32> to vector<16x128xf32>
    %50 = arith.mulf %49, %27 : vector<16x128xf32>
    %c0_16 = arith.constant 0 : index
    %c0_17 = arith.constant 0 : index
    %51 = vector.load %arg2[%c0_16, %c0_17] : memref<16x128xf32, #tpu.memory_space<vmem>>, vector<16x128xf32>
    tpu.vector_store %arg2[%c0_16, %c0_17], %50 {strides = array<i32>} : memref<16x128xf32, #tpu.memory_space<vmem>>, vector<16x128xf32>,
    return
  }
  func.func @transform_0(%arg0: i32) -> (i32, i32) {
    %c0_i32 = arith.constant 0 : i32
    %c0_i32_0 = arith.constant 0 : i32
    return %arg0, %c0_i32 : i32, i32
  }
  func.func @transform_1(%arg0: i32) -> (i32, i32) {
    %c0_i32 = arith.constant 0 : i32
    %c0_i32_0 = arith.constant 0 : i32
    return %arg0, %c0_i32 : i32, i32
  }
}

</mosaic_0001>

<bundles_post_ra>
// kernel: tpu_custom_call.1
= control target key start
LH: loop header
LB: loop body
LE: loop exit
PB: predicated region body
PF: predicated region fallthrough
CT: control target
= control target key end

     0   :  { %6 = vsyncpa [#allocation3], 0  ;;  %s304_s0 = inlined_call_operand.hbm [shape: f32[16,128], index: 0, kind: input, shape index: {}]   ;;  %s305_s1 = inlined_call_operand.hbm [shape: f32[16,128], index: 1, kind: output, shape index: {}]  }
   0x1   :  { %7 = vsyncpa [#allocation4], 0  ;;  %s250_s6 = smov [#allocation2]   ;;  %s202_s10 = scalar_lea.hbm %s304_s0, 256 }
   0x2   :  { %s13_s7 = sshll.u32 %s250_s6, 4  ;;  %p203_p0 = scmp.ne.s32.totalorder %s304_s0, %s202_s10  ;;  %s14_s7 = int_to_ptr.vmem [resolvable:$true] %s13_s7 }
   0x3   :  { %p206_p1 = scmp.lt.u32.totalorder %s202_s10, %s304_s0 }
   0x5   :  { %p208_p2 = pnand %p206_p1, %p203_p0 }
   0x7   :  { %211 = shalt.err (!%p208_p2)
}
   0x8   :  { %s212_s15 = scalar_lea.vmem %s14_s7, 256  ;;  %p217_p4 = scmp.lt.s32.totalorder %s14_s7, %s14_s7 }
   0x9   :  { %p213_p3 = scmp.ne.s32.totalorder %s14_s7, %s212_s15  ;;  %p218_p5 = scmp.lt.s32.totalorder %s212_s15, %s212_s15 }
   0xb   :  { %p219_p6 = por %p218_p5, %p217_p4 }
   0xd   :  { %p220_p7 = pnand %p219_p6, %p213_p3 }
   0xf   :  { %223 = shalt.err (!%p220_p7)
}
  0x10   :  { %s251_s16 = smov 128   ;;  %s252_s17 = smov 8  }
  0x11   :  { %19 = dma.hbm_to_vmem [thread:$0]  %s304_s0, 256, %s14_s7, [#allocation3], %s251_s16, %s251_s16, %s252_s17  }
  0x12   :  { %246 = dma.done.wait [#allocation3], 256  }
  0x13   :  { %247 = vsyncadd [#allocation3], 4294967040  ;;  %v279_v0 = vld [vmem:[#allocation2] sm:$0xff]  ;;  %v281_v1 = vld [vmem:[#allocation2 + $0x8] sm:$0xff]  ;;  %s253_s0 = smov [#allocation5]  }
  0x14   :  { %v25_v2 = vmul.f32 %v279_v0, %v279_v0  ;;  %v26_v3 = vmul.f32 %v281_v1, %v281_v1  ;;  %s152_s20 = sshll.u32 %s253_s0, 4  ;;  %s153_s20 = int_to_ptr.vmem [resolvable:$true] %s152_s20 }
  0x15   :  { %s224_s21 = scalar_lea.vmem %s153_s20, 256  ;;  %p229_p9 = scmp.lt.s32.totalorder %s153_s20, %s153_s20 }
  0x16   :  { %27 = vadd.xlane.f32.xlu0 %v25_v2  ;;  %p225_p8 = scmp.ne.s32.totalorder %s153_s20, %s224_s21  ;;  %p230_p10 = scmp.lt.s32.totalorder %s224_s21, %s224_s21 }
  0x18   :  { %p231_p11 = por %p230_p10, %p229_p9 }
  0x1a   :  { %29 = vadd.xlane.f32.xlu0 %v26_v3  ;;  %p232_p12 = pnand %p231_p11, %p225_p8 }
  0xa3   :  { %v28_v4 = vpop.xlane.xlu0 %27 }
  0xa4   :  { %170 = vrsqrt.f32 %v28_v4  ;;  %vm33_vm0 = vcmp.eq.f32.partialorder %v28_v4, inf  ;;  %v36_v8 = vand.u32 2147483648, %v28_v4  ;;  %vm35_vm1 = vcmp.eq.f32.partialorder %v28_v4, 0.0 }
  0xa7   :  { %v30_v5 = vpop.xlane.xlu0 %29 }
  0xa8   :  { %172 = vrsqrt.f32 %v30_v5  ;;  %vm40_vm2 = vcmp.eq.f32.partialorder %v30_v5, inf  ;;  %v43_v14 = vand.u32 2147483648, %v30_v5  ;;  %vm42_vm3 = vcmp.eq.f32.partialorder %v30_v5, 0.0 }
  0xae   :  { %v171_v6 = vpop.eup %170 }
  0xaf   :  { %v32_v7 = vmul.f32 %v171_v6, %v28_v4 }
  0xb1   :  { %v34_v9 = vsel %vm33_vm0, %v28_v4, %v32_v7 }
  0xb2   :  { %v173_v10 = vpop.eup %172  ;;  %v37_v11 = vsel %vm35_vm1, %v36_v8, %v34_v9 }
  0xb3   :  { %v45_v12 = vmax.f32 %v37_v11, 1e-15  ;;  %v39_v13 = vmul.f32 %v173_v10, %v30_v5 }
  0xb5   :  { %v164_v15 = vclamps-f32 %v45_v12, 0.9999999  ;;  %v41_v16 = vsel %vm40_vm2, %v30_v5, %v39_v13 }
  0xb6   :  { %v44_v17 = vsel %vm42_vm3, %v43_v14, %v41_v16 }
  0xb7   :  { %v46_v18 = vmax.f32 %v44_v17, 1e-15  ;;  %v53_v19 = vadd.f32 1.0, %v164_v15  ;;  %v71_v20 = vsub.f32 0.0, %v164_v15  ;;  %v56_v25 = vmul.f32 -0.5, %v164_v15 }
  0xb8   :  { %v59_v29 = vand.u32 2147483647, %v164_v15 }
  0xb9   :  { %v165_v21 = vclamps-f32 %v46_v18, 0.9999999  ;;  %174 = vlog2.f32 %v53_v19  ;;  %v73_v22 = vadd.f32 1.0, %v71_v20  ;;  %v76_v27 = vmul.f32 -0.5, %v71_v20 }
  0xba   :  { %v57_v28 = vadd.f32 1.0, %v56_v25  ;;  %v79_v34 = vand.u32 2147483647, %v71_v20  ;;  %vm60_vm4 = vcmp.lt.f32.partialorder %v59_v29, 0.0004427343 }
  0xbb   :  { %v62_v23 = vadd.f32 1.0, %v165_v21  ;;  %176 = vlog2.f32 %v73_v22  ;;  %v72_v24 = vsub.f32 0.0, %v165_v21  ;;  %v77_v30 = vadd.f32 1.0, %v76_v27 }
  0xbc   :  { %v65_v31 = vmul.f32 -0.5, %v165_v21  ;;  %v58_v37 = vmul.f32 %v164_v15, %v57_v28  ;;  %vm80_vm5 = vcmp.lt.f32.partialorder %v79_v34, 0.0004427343  ;;  %v68_v43 = vand.u32 2147483647, %v165_v21 }
  0xbd   :  { %178 = vlog2.f32 %v62_v23  ;;  %v82_v26 = vadd.f32 1.0, %v72_v24  ;;  %v85_v32 = vmul.f32 -0.5, %v72_v24  ;;  %v78_v40 = vmul.f32 %v77_v30, %v71_v20 }
  0xbe   :  { %v66_v41 = vadd.f32 1.0, %v65_v31  ;;  %v88_v44 = vand.u32 2147483647, %v72_v24  ;;  %vm69_vm6 = vcmp.lt.f32.partialorder %v68_v43, 0.0004427343 }
  0xbf   :  { %180 = vlog2.f32 %v82_v26  ;;  %v86_v42 = vadd.f32 1.0, %v85_v32 }
  0xc0   :  { %182 = vrcp.f32 %v45_v12  ;;  %v67_v50 = vmul.f32 %v165_v21, %v66_v41  ;;  %vm89_vm7 = vcmp.lt.f32.partialorder %v88_v44, 0.0004427343 }
  0xc1   :  { %184 = vrcp.f32 %v46_v18  ;;  %v87_v52 = vmul.f32 %v86_v42, %v72_v24 }
  0xc3   :  { %v175_v33 = vpop.eup %174 }
  0xc4   :  { %v55_v35 = vmul.f32 0.6931472, %v175_v33 }
  0xc5   :  { %v177_v36 = vpop.eup %176 }
  0xc6   :  { %v75_v39 = vmul.f32 0.6931472, %v177_v36  ;;  %v61_v45 = vsel %vm60_vm4, %v58_v37, %v55_v35 }
  0xc7   :  { %v179_v38 = vpop.eup %178 }
  0xc8   :  { %v81_v46 = vsel %vm80_vm5, %v78_v40, %v75_v39  ;;  %v64_v47 = vmul.f32 0.6931472, %v179_v38 }
  0xc9   :  { %v181_v48 = vpop.eup %180  ;;  %v91_v49 = vsub.f32 %v61_v45, %v81_v46 }
  0xca   :  { %v84_v51 = vmul.f32 0.6931472, %v181_v48  ;;  %v183_v54 = vpop.eup %182  ;;  %v70_v55 = vsel %vm69_vm6, %v67_v50, %v64_v47 }
  0xcb   :  { %v93_v53 = vmul.f32 0.5, %v91_v49  ;;  %v185_v59 = vpop.eup %184 }
  0xcc   :  { %v90_v56 = vsel %vm89_vm7, %v87_v52, %v84_v51 }
  0xcd   :  { %v95_v57 = vmul.f32 %v183_v54, %v93_v53  ;;  %v92_v58 = vsub.f32 %v70_v55, %v90_v56 }
  0xcf   :  { %v97_v60 = vmul.f32 %v95_v57, %v279_v0  ;;  %v94_v61 = vmul.f32 0.5, %v92_v58 }
  0xd1   :  { %v99_v62 = vmax.f32 %v97_v60, 0.0  ;;  %v96_v63 = vmul.f32 %v185_v59, %v94_v61 }
  0xd3   :  { %v101_v2 = vmul.f32 %v99_v62, %v99_v62  ;;  %v98_v3 = vmul.f32 %v96_v63, %v281_v1 }
  0xd5   :  { %103 = vadd.xlane.f32.xlu1 %v101_v2  ;;  %v100_v4 = vmax.f32 %v98_v3, 0.0 }
  0xd7   :  { %v102_v5 = vmul.f32 %v100_v4, %v100_v4 }
  0xd9   :  { %105 = vadd.xlane.f32.xlu1 %v102_v5 }
 0x162   :  { %v104_v6 = vpop.xlane.xlu1 %103 }
 0x163   :  { %186 = vrsqrt.f32 %v104_v6  ;;  %vm109_vm8 = vcmp.eq.f32.partialorder %v104_v6, inf  ;;  %v112_v10 = vand.u32 2147483648, %v104_v6  ;;  %vm111_vm9 = vcmp.eq.f32.partialorder %v104_v6, 0.0 }
 0x166   :  { %v106_v7 = vpop.xlane.xlu1 %105 }
 0x167   :  { %188 = vrsqrt.f32 %v106_v7  ;;  %vm116_vm10 = vcmp.eq.f32.partialorder %v106_v7, inf  ;;  %v119_v1 = vand.u32 2147483648, %v106_v7  ;;  %vm118_vm11 = vcmp.eq.f32.partialorder %v106_v7, 0.0 }
 0x16d   :  { %v187_v8 = vpop.eup %186 }
 0x16e   :  { %v108_v9 = vmul.f32 %v187_v8, %v104_v6 }
 0x170   :  { %v110_v11 = vsel %vm109_vm8, %v104_v6, %v108_v9 }
 0x171   :  { %v189_v0 = vpop.eup %188  ;;  %v113_v12 = vsel %vm111_vm9, %v112_v10, %v110_v11 }
 0x172   :  { %v121_v13 = vmax.f32 %v113_v12, 1e-15  ;;  %v115_v14 = vmul.f32 %v189_v0, %v106_v7 }
 0x174   :  { %v123_v15 = vmul.f32 0.70710677, %v121_v13  ;;  %v117_v16 = vsel %vm116_vm10, %v106_v7, %v115_v14 }
 0x175   :  { %v120_v17 = vsel %vm118_vm11, %v119_v1, %v117_v16 }
 0x176   :  { %190 = vtanh.f32 %v123_v15  ;;  %v122_v18 = vmax.f32 %v120_v17, 1e-15 }
 0x178   :  { %v124_v19 = vmul.f32 0.70710677, %v122_v18 }
 0x17a   :  { %192 = vtanh.f32 %v124_v19 }
 0x17b   :  { %194 = vrcp.f32 %v123_v15 }
 0x180   :  { %v191_v20 = vpop.eup %190 }
 0x181   :  { %v131_v21 = vmul.f32 1.4142135, %v191_v20 }
 0x183   :  { %v133_v22 = vmax.f32 %v131_v21, 1e-15 }
 0x184   :  { %v193_v23 = vpop.eup %192 }
 0x185   :  { %v132_v24 = vmul.f32 1.4142135, %v193_v23  ;;  %196 = vrcp.f32 %v133_v22  ;;  %v195_v26 = vpop.eup %194 }
 0x186   :  { %198 = vrcp.f32 %v124_v19  ;;  %v129_v30 = vmul.f32 %v195_v26, %v191_v20 }
 0x187   :  { %v134_v25 = vmax.f32 %v132_v24, 1e-15 }
 0x189   :  { %200 = vrcp.f32 %v134_v25 }
 0x18f   :  { %v197_v27 = vpop.eup %196 }
 0x190   :  { %v137_v28 = vmul.f32 1.4085567, %v197_v27  ;;  %v199_v29 = vpop.eup %198 }
 0x191   :  { %v130_v35 = vmul.f32 %v199_v29, %v193_v23 }
 0x192   :  { %v139_v31 = vmin.f32 %v137_v28, 1.0 }
 0x193   :  { %v201_v32 = vpop.eup %200 }
 0x194   :  { %v138_v33 = vmul.f32 1.4085567, %v201_v32  ;;  %v141_v34 = vmul.f32 %v139_v31, %v129_v30 }
 0x196   :  { %v140_v36 = vmin.f32 %v138_v33, 1.0  ;;  %v143_v37 = vmul.f32 %v141_v34, %v99_v62 }
 0x198   :  { %v142_v38 = vmul.f32 %v140_v36, %v130_v35  ;;  %145 = vst [vmem:[#allocation5] sm:$0xff] %v143_v37 }
 0x19a   :  { %v144_v39 = vmul.f32 %v142_v38, %v100_v4 }
 0x19c   :  { %146 = vst [vmem:[#allocation5 + $0x8] sm:$0xff] %v144_v39 }
 0x19d   :  { %235 = shalt.err (!%p232_p12)
}
 0x19e   :  { %s236_s24 = scalar_lea.hbm %s305_s1, 256 }
 0x19f   :  { %p237_p13 = scmp.ne.s32.totalorder %s305_s1, %s236_s24  ;;  %p240_p0 = scmp.lt.u32.totalorder %s236_s24, %s305_s1 }
 0x1a1   :  { %p242_p1 = pnand %p240_p0, %p237_p13 }
 0x1a3   :  { %245 = shalt.err (!%p242_p1)
}
 0x1a4   :  { %158 = dma.vmem_to_hbm [thread:$0]  %s153_s20, 256, %s305_s1, [#allocation4], %s251_s16, %s251_s16, %s252_s17  }
 0x1a5   :  { %248 = dma.done.wait [#allocation4], 256  }
 0x1a6   :  { %249 = vsyncadd [#allocation4], 4294967040 }
 0x1a7   :  { %162 = vsyncpa [#allocation3], 1 }
 0x1a8   :  { %163 = vsyncpa [#allocation4], 1 }

</bundles_post_ra>
